<compile_context>
chip_gen: v6e
topology: v6e:2x2x1
jax: 0.10.0
libtpu: 0.0.40
codegen_flags: <defaults>
</compile_context>

<pallas_src>
import functools

import jax
import jax.numpy as jnp
from jax.experimental import pallas as pl
from jax.experimental.pallas import tpu as pltpu


def _round_up(a: int, b: int) -> int:
    return (a + b - 1) // b * b


def _geglu_kernel(x_ref, w_ref, b_ref, o_ref):
    # x_ref: (tm, d_in)        compute dtype (bf16 by default)
    # w_ref: (d_in, 2*tn)      compute dtype; cols [0:tn]=value half, [tn:2tn]=gate half
    # b_ref: (1, 2*tn)         f32
    # o_ref: (tm, tn)          output dtype
    tn = o_ref.shape[-1]
    # Single fused MXU matmul for both halves, f32 accumulation.
    proj = jnp.dot(x_ref[...], w_ref[...], preferred_element_type=jnp.float32)
    proj = proj + b_ref[...]
    h = proj[:, :tn]
    g = proj[:, tn:]
    # Exact (erf) GELU, f32 epilogue.
    gelu_g = 0.5 * g * (1.0 + jax.lax.erf(g * jnp.float32(0.7071067811865476)))
    o_ref[...] = (h * gelu_g).astype(o_ref.dtype)


@functools.partial(jax.jit, static_argnames=("tm", "tn", "compute_dtype"))
def geglu_pallas(x, w, b, *, tm=256, tn=512, compute_dtype=jnp.bfloat16):
    """GeGLU forward.

    x: [batch, seq, d_in]
    w: [2*d_out, d_in]   (PyTorch nn.Linear weight layout)
    b: [2*d_out]
    returns [batch, seq, d_out]
    """
    batch, seq, d_in = x.shape
    d_out = w.shape[0] // 2

    # ---- weight prep (done once; constant-folds under jit for fixed weights) ----
    wx = jnp.transpose(w[:d_out, :])          # (d_in, d_out)
    wg = jnp.transpose(w[d_out:, :])          # (d_in, d_out)
    bx = b[:d_out]
    bg = b[d_out:]

    # ---- tile sizing (robust to small / ragged shapes via zero padding) ----
    m = batch * seq
    tm_eff = min(tm, _round_up(m, 8))
    m_pad = _round_up(m, tm_eff)

    tn_eff = min(tn, _round_up(d_out, 128))
    d_out_pad = _round_up(d_out, tn_eff)
    n_tiles = d_out_pad // tn_eff

    if d_out_pad != d_out:
        pad_n = d_out_pad - d_out
        wx = jnp.pad(wx, ((0, 0), (0, pad_n)))
        wg = jnp.pad(wg, ((0, 0), (0, pad_n)))
        bx = jnp.pad(bx, (0, pad_n))
        bg = jnp.pad(bg, (0, pad_n))

    # Fuse value/gate halves per N-tile: columns of tile j are [Wx_j | Wg_j].
    wcat = jnp.concatenate(
        [wx.reshape(d_in, n_tiles, tn_eff), wg.reshape(d_in, n_tiles, tn_eff)],
        axis=-1,
    ).reshape(d_in, n_tiles * 2 * tn_eff).astype(compute_dtype)
    bcat = jnp.concatenate(
        [bx.reshape(n_tiles, tn_eff), bg.reshape(n_tiles, tn_eff)],
        axis=-1,
    ).reshape(1, n_tiles * 2 * tn_eff).astype(jnp.float32)

    x2d = x.reshape(m, d_in)
    if m_pad != m:
        x2d = jnp.pad(x2d, ((0, m_pad - m), (0, 0)))
    x2d = x2d.astype(compute_dtype)

    out_dtype = x.dtype
    itemsize_c = jnp.dtype(compute_dtype).itemsize
    itemsize_o = jnp.dtype(out_dtype).itemsize
    cost = pl.CostEstimate(
        flops=2 * m_pad * d_in * (2 * d_out_pad),
        transcendentals=m_pad * d_out_pad,
        bytes_accessed=(m_pad * d_in * itemsize_c
                        + d_in * 2 * d_out_pad * itemsize_c
                        + 2 * d_out_pad * 4
                        + m_pad * d_out_pad * itemsize_o),
    )

    out2d = pl.pallas_call(
        _geglu_kernel,
        out_shape=jax.ShapeDtypeStruct((m_pad, d_out_pad), out_dtype),
        grid_spec=pltpu.PrefetchScalarGridSpec(
            num_scalar_prefetch=0,
            grid=(m_pad // tm_eff, n_tiles),
            in_specs=[
                pl.BlockSpec((tm_eff, d_in), lambda i, j: (i, 0)),          # x rows
                pl.BlockSpec((d_in, 2 * tn_eff), lambda i, j: (0, j)),      # [Wx|Wg] N-tile
                pl.BlockSpec((1, 2 * tn_eff), lambda i, j: (0, j)),         # [bx|bg] N-tile
            ],
            out_specs=pl.BlockSpec((tm_eff, tn_eff), lambda i, j: (i, j)),
        ),
        compiler_params=pltpu.CompilerParams(
            dimension_semantics=("parallel", "parallel"),
            vmem_limit_bytes=48 << 20,
        ),
        cost_estimate=cost,
    )(x2d, wcat, bcat)

    return out2d[:m, :d_out].reshape(batch, seq, d_out)


def geglu_ref(x, w, b):
    d_out = w.shape[0] // 2
    proj = jnp.einsum("bsi,oi->bso", x, w) + b
    h, g = proj[..., :d_out], proj[..., d_out:]
    return h * jax.nn.gelu(g, approximate=False)


if __name__ == "__main__":
    key = jax.random.PRNGKey(0)
    batch, seq, d_in, d_out = 2, 8, 32, 64

    kx, kw, kb = jax.random.split(key, 3)
    x = jax.random.normal(kx, (batch, seq, d_in), dtype=jnp.float32)
    # Deterministic nn.Linear-style init: U(-1/sqrt(d_in), 1/sqrt(d_in))
    bound = 1.0 / (d_in ** 0.5)
    w = jax.random.uniform(kw, (2 * d_out, d_in), minval=-bound, maxval=bound,
                           dtype=jnp.float32)
    b = jax.random.uniform(kb, (2 * d_out,), minval=-bound, maxval=bound,
                           dtype=jnp.float32)

    ref = geglu_ref(x, w, b)

    # Default fast path: bf16 matmul inputs, f32 accumulation + epilogue.
    out = geglu_pallas(x, w, b)
    jax.block_until_ready(out)
    assert out.shape == (batch, seq, d_out)
    assert jnp.allclose(out, ref, atol=2e-2, rtol=2e-2)

    # Exactness sanity check with an f32 compute path.
    out_f32 = geglu_pallas(x, w, b, compute_dtype=jnp.float32)
    jax.block_until_ready(out_f32)
    assert jnp.allclose(out_f32, ref, atol=1e-5, rtol=1e-5)

    print("KERNEL_OK")
</pallas_src>

<mosaic_0001>
module attributes {stable_mosaic.version = 11 : i64} {
  func.func @_geglu_kernel(%arg0: i32, %arg1: i32, %arg2: memref<16x32xbf16, #tpu.memory_space<vmem>>, %arg3: memref<32x256xbf16, #tpu.memory_space<vmem>>, %arg4: memref<1x256xf32, #tpu.memory_space<vmem>>, %arg5: memref<16x128xf32, #tpu.memory_space<vmem>>) attributes {dimension_semantics = [#tpu.dimension_semantics<parallel>, #tpu.dimension_semantics<parallel>], iteration_bounds = array<i64: 1, 1>, scalar_prefetch = 0 : i64, scratch_operands = 0 : i64, tpu.core_type = #tpu.core_type<tc>, window_params = [{transform_indices = @transform_0, window_bounds = array<i64: 16, 32>}, {transform_indices = @transform_1, window_bounds = array<i64: 32, 256>}, {transform_indices = @transform_2, window_bounds = array<i64: 1, 256>}, {transform_indices = @transform_3, window_bounds = array<i64: 16, 128>}]} {
    %c0 = arith.constant 0 : index
    %c0_0 = arith.constant 0 : index
    %0 = vector.load %arg2[%c0, %c0_0] : memref<16x32xbf16, #tpu.memory_space<vmem>>, vector<16x32xbf16>
    %c0_1 = arith.constant 0 : index
    %c0_2 = arith.constant 0 : index
    %1 = vector.load %arg3[%c0_1, %c0_2] : memref<32x256xbf16, #tpu.memory_space<vmem>>, vector<32x256xbf16>
    %cst = arith.constant dense<0.000000e+00> : vector<16x256xf32>
    %2 = tpu.matmul %0, %1, %cst {dimension_numbers = #tpu.dot_dimension_numbers<[1], [0], [0], [1], [0, 0, 1, 1], [], []>} : vector<16x32xbf16>, vector<32x256xbf16>, vector<16x256xf32> -> vector<16x256xf32>
    %c0_3 = arith.constant 0 : index
    %c0_4 = arith.constant 0 : index
    %3 = vector.load %arg4[%c0_3, %c0_4] : memref<1x256xf32, #tpu.memory_space<vmem>>, vector<1x256xf32>
    %4 = vector.broadcast %3 : vector<1x256xf32> to vector<16x256xf32>
    %5 = arith.addf %2, %4 : vector<16x256xf32>
    %6 = vector.extract_strided_slice %5 {offsets = [0, 0], sizes = [16, 128], strides = [1, 1]} : vector<16x256xf32> to vector<16x128xf32>
    %7 = vector.extract_strided_slice %5 {offsets = [0, 128], sizes = [16, 128], strides = [1, 1]} : vector<16x256xf32> to vector<16x128xf32>
    %cst_5 = arith.constant 5.000000e-01 : f32
    %8 = vector.broadcast %cst_5 : f32 to vector<16x128xf32>
    %9 = arith.mulf %8, %7 : vector<16x128xf32>
    %cst_6 = arith.constant 0.707106769 : f32
    %10 = vector.broadcast %cst_6 : f32 to vector<16x128xf32>
    %11 = arith.mulf %7, %10 : vector<16x128xf32>
    %12 = math.erf %11 : vector<16x128xf32>
    %cst_7 = arith.constant 1.000000e+00 : f32
    %13 = vector.broadcast %cst_7 : f32 to vector<16x128xf32>
    %14 = arith.addf %13, %12 : vector<16x128xf32>
    %15 = arith.mulf %9, %14 : vector<16x128xf32>
    %16 = arith.mulf %6, %15 : vector<16x128xf32>
    %c0_8 = arith.constant 0 : index
    %c0_9 = arith.constant 0 : index
    %17 = vector.load %arg5[%c0_8, %c0_9] : memref<16x128xf32, #tpu.memory_space<vmem>>, vector<16x128xf32>
    tpu.vector_store %arg5[%c0_8, %c0_9], %16 {strides = array<i32>} : memref<16x128xf32, #tpu.memory_space<vmem>>, vector<16x128xf32>,
    return
  }
  func.func @transform_0(%arg0: i32, %arg1: i32) -> (i32, i32) {
    %c0_i32 = arith.constant 0 : i32
    %c0_i32_0 = arith.constant 0 : i32
    return %arg0, %c0_i32 : i32, i32
  }
  func.func @transform_1(%arg0: i32, %arg1: i32) -> (i32, i32) {
    %c0_i32 = arith.constant 0 : i32
    %c0_i32_0 = arith.constant 0 : i32
    return %c0_i32, %arg1 : i32, i32
  }
  func.func @transform_2(%arg0: i32, %arg1: i32) -> (i32, i32) {
    %c0_i32 = arith.constant 0 : i32
    %c0_i32_0 = arith.constant 0 : i32
    return %c0_i32, %arg1 : i32, i32
  }
  func.func @transform_3(%arg0: i32, %arg1: i32) -> (i32, i32) {
    %c0_i32 = arith.constant 0 : i32
    return %arg0, %arg1 : i32, i32
  }
}

</mosaic_0001>

<bundles_post_ra>
// kernel: geglu_pallas.1
= control target key start
LH: loop header
LB: loop body
LE: loop exit
PB: predicated region body
PF: predicated region fallthrough
CT: control target
= control target key end

     0   :  { %v141_v1 = vmov 0   ;;  %vm58_vm0 = vcmask 261120   ;;  %v23_v6 = vlaneseq  ;;  %s186_s1 = inlined_call_operand.vmem [shape: bf16[32,256], index: 1, kind: input, shape index: {}]   ;;  %s187_s0 = inlined_call_operand.vmem [shape: bf16[16,32], index: 0, kind: input, shape index: {}]   ;;  %s188_s2 = inlined_call_operand.vmem [shape: f32[1,256], index: 2, kind: input, shape index: {}]   ;;  %s189_s3 = inlined_call_operand.vmem [shape: f32[16,128], index: 3, kind: output, shape index: {}]  }
   0x1   :  { %v130_v0 = vld [vmem:[%s186_s1 + $0x14] ss:$8 sps:$4 sm:$0xff]   ;;  %94 = vmatprep.mubr.bf16.mxu0 %v141_v1  ;;  %v132_v2 = vld [vmem:[%s186_s1 + $0x10] ss:$8 sps:$4 sm:$0xff]   ;;  %v133_v3 = vld [vmem:[%s186_s1 + $0x4] ss:$8 sps:$4 sm:$0xff]  }
   0x2   :  { %74 = vmatprep.subr.bf16.mxu0 %v130_v0  ;;  %v135_v4 = vld [vmem:[%s186_s1] ss:$8 sps:$4 sm:$0xff]   ;;  %v24_v7 = vshrl.u32 %v23_v6, 7 }
   0x3   :  { %75 = vmatpush1.bf16.msra.mxu0 %v132_v2  ;;  %v136_v5 = vld [vmem:[%s187_s0] sm:$0xff]  }
   0x4   :  { %76 = vmatprep.subr.bf16.mxu0 %v133_v3  ;;  %v29_v8 = vsub.s32 1, %v24_v7  ;;  %v21_v9 = vld [vmem:[%s188_s2] sm:$0x3]  ;;  %v25_v19 = vsub.s32 0, %v24_v7 }
   0x6   :  { %v30_v10 = vrot.slane %v21_v9, %v29_v8  ;;  %v26_v20 = vrot.slane %v21_v9, %v25_v19 }
   0x7   :  { %77 = vmatpush1.bf16.msra.mxu0 %v135_v4 }
   0xa   :  { %128 = vmatmul.mubr.msk.bf16.vlgmr.msra.gmra.mxu0 %vm58_vm0, %v136_v5 }
  0xca   :  { %v96_v11 = vpop.f32.mrf.mxu0 }
  0xcb   :  { %v97_v24 = vadd.f32 %v96_v11, %v26_v20 }
  0xcc   :  { %v98_v12 = vpop.f32.mrf.mxu0 }
  0xcd   :  { %v99_v13 = vadd.f32 %v98_v12, %v30_v10 }
  0xce   :  { %v100_v14 = vpop.f32.mrf.mxu0 }
  0xcf   :  { %v107_v15 = vmul.f32 0.70710677, %v99_v13  ;;  %v105_v22 = vmul.f32 0.5, %v99_v13  ;;  %v101_v30 = vadd.f32 %v100_v14, %v26_v20 }
  0xd0   :  { %v102_v16 = vpop.f32.mrf.mxu0 }
  0xd1   :  { %137 = verf.f32 %v107_v15  ;;  %v103_v17 = vadd.f32 %v102_v16, %v30_v10 }
  0xd3   :  { %v108_v18 = vmul.f32 0.70710677, %v103_v17  ;;  %v106_v28 = vmul.f32 0.5, %v103_v17 }
  0xd5   :  { %139 = verf.f32 %v108_v18 }
  0xde   :  { %v138_v21 = vpop.eup %137 }
  0xdf   :  { %v111_v23 = vadd.f32 1.0, %v138_v21 }
  0xe1   :  { %v113_v25 = vmul.f32 %v111_v23, %v105_v22 }
  0xe2   :  { %v140_v26 = vpop.eup %139 }
  0xe3   :  { %v115_v27 = vmul.f32 %v113_v25, %v97_v24  ;;  %v112_v29 = vadd.f32 1.0, %v140_v26 }
  0xe5   :  { %117 = vst [vmem:[%s189_s3] sm:$0xff] %v115_v27  ;;  %v114_v31 = vmul.f32 %v112_v29, %v106_v28 }
  0xe7   :  { %v116_v32 = vmul.f32 %v114_v31, %v101_v30 }
  0xe9   :  { %118 = vst [vmem:[%s189_s3 + $0x8] sm:$0xff] %v116_v32 }

</bundles_post_ra>
